<compile_context>
chip_gen: v7x
topology: tpu7x:2x2x1
jax: 0.10.0
libtpu: 0.0.40
codegen_flags: <defaults>
</compile_context>

<pallas_src>
import jax
import jax.numpy as jnp
from jax.experimental import pallas as pl
from jax.experimental.pallas import tpu as pltpu


# x[b, in] . W[out, in] -> [b, out]  (contract dim 1 of both; no W transpose)
_DN_XWT = (((1,), (1,)), ((), ()))


def _control_unit_kernel(
    question_ref,   # [bb, dim]    input dtype
    context_ref,    # [bb, L, dim] input dtype
    lens_ref,       # [bb, 1]      int32
    w_shared_ref,   # [dim, dim]   f32, (out, in) layout
    b_shared_ref,   # [1, dim]     f32
    w_step_ref,     # [dim, dim]   f32, (out, in), pre-scaled by w_attn
    b_step_ref,     # [1, dim]     f32, pre-scaled by w_attn
    control_ref,    # [bb, dim]    out (input dtype)
    masked_ref,     # [bb, L] f32  out: post-mask logits (b_attn added in wrapper)
    logits_ref,     # [bb, L] f32  out: pre-mask logits  (b_attn added in wrapper)
):
    bb, L, dim = context_ref.shape

    # --- question projections (MXU matmuls, EUP tanh) -----------------------
    q = question_ref[...]
    if q.dtype != w_shared_ref.dtype:            # tiny [bb, dim] tensor; cheap
        q = q.astype(w_shared_ref.dtype)
    q1 = jnp.tanh(
        jax.lax.dot_general(q, w_shared_ref[...], _DN_XWT,
                            preferred_element_type=jnp.float32)
        + b_shared_ref[...]
    )
    # Per-step projection already has the attn Linear(dim,1) weight folded in,
    # so q2w[b, d] == (different_question_projs[step](q1) * w_attn)[b, d].
    q2w = (
        jax.lax.dot_general(q1, w_step_ref[...], _DN_XWT,
                            preferred_element_type=jnp.float32)
        + b_step_ref[...]
    )                                                        # [bb, dim] f32

    # --- attention logits (lane-dense [bb, L]) -------------------------------
    ctx = context_ref[...]                                   # native dtype
    prod = ctx * q2w.astype(ctx.dtype)[:, None, :]           # input-dtype VPU mul
    logits = jnp.sum(prod, axis=-1, dtype=jnp.float32)       # [bb, L], f32 acc

    # --- length mask + softmax over L (all lane-dense) ------------------------
    pos = jax.lax.broadcasted_iota(jnp.int32, (bb, L), 1)
    pad = (pos >= lens_ref[...]).astype(jnp.float32)         # [bb, L]
    masked = logits + pad * jnp.float32(-1e30)

    m = jnp.max(masked, axis=-1, keepdims=True)              # [bb, 1]
    e = jnp.exp(masked - m)                                  # [bb, L]
    s = jnp.sum(e, axis=-1, keepdims=True)                   # [bb, 1]
    attn = e / s                                             # [bb, L]

    # --- control = sum_l attn * context (MXU batched contraction) ------------
    attn3 = attn.astype(ctx.dtype)[:, None, :]               # [bb, 1, L]
    control = jnp.einsum("bql,bld->bqd", attn3, ctx,
                         preferred_element_type=jnp.float32)[:, 0, :]

    control_ref[...] = control.astype(control_ref.dtype)
    masked_ref[...] = masked.astype(masked_ref.dtype)
    logits_ref[...] = logits.astype(logits_ref.dtype)


def _pick_block_b(B, L, dim, ctx_itemsize, q_itemsize, budget_bytes=20 << 20):
    """Largest 8-aligned divisor-of-B batch tile whose double-buffered working
    set fits the VMEM budget; prefers >= 2 grid steps (DMA/compute pipelining
    and megacore sharding on v7x). Budget is conservative for v7x's 64 MiB."""
    per_row = (L * dim * ctx_itemsize            # context tile (dominant)
               + dim * q_itemsize                # question tile
               + dim * ctx_itemsize              # control out tile
               + 2 * L * 4                       # masked + logits out tiles
               + 4)                              # lens
    max_rows = max(1, budget_bytes // (2 * per_row))      # 2x: double buffering
    cands = [d for d in range(8, B + 1, 8) if B % d == 0 and d <= max_rows]
    if not cands:
        return B                                 # tiny batch: single full tile
    pipelined = [d for d in cands if B // d >= 2]
    return max(pipelined) if pipelined else max(cands)


def prepare_control_unit_params(params):
    """One-time host prep (hoisted out of the per-step call path): fold the
    attn Linear(dim, 1) weight into each per-step projection as a column scale
    and pre-shape the biases. Weights stay in (out, in) layout — no transposes
    are materialized, the kernel contracts them directly."""
    dim = params["w_shared"].shape[0]
    w_attn = params["w_attn"].reshape(dim).astype(jnp.float32)        # (dim,)
    return {
        "w_shared": params["w_shared"].astype(jnp.float32),           # (dim, dim)
        "b_shared": params["b_shared"].reshape(1, dim).astype(jnp.float32),
        "w_steps_scaled": (params["w_steps"].astype(jnp.float32)
                           * w_attn[None, :, None]),                  # (S, dim, dim)
        "b_steps_scaled": (params["b_steps"].astype(jnp.float32)
                           * w_attn[None, :]),                        # (S, dim)
        "b_attn": params["b_attn"].reshape(()).astype(jnp.float32),
    }


def control_unit_forward(step, context, question, context_lens, prepared,
                         *, block_b=None):
    """Fused non-DAFT ControlUnit step.

    Returns (control, attn_weight, attn_weights) mirroring the PyTorch module:
      control      [B, dim]
      attn_weight  [B, L, 1]   (post-mask logits)
      attn_weights list of 1   (pre-mask logits, [B, L, 1])
    """
    B, L, dim = context.shape
    assert question.shape == (B, dim)

    if block_b is None:
        block_b = _pick_block_b(B, L, dim, context.dtype.itemsize,
                                question.dtype.itemsize)
    assert B % block_b == 0
    assert block_b == B or block_b % 8 == 0, "batch tile must be 8-aligned"

    w_shared = prepared["w_shared"]
    b_shared = prepared["b_shared"]
    w_step = prepared["w_steps_scaled"][step]          # static per-step slice
    b_step = prepared["b_steps_scaled"][step].reshape(1, dim)
    lens = context_lens.astype(jnp.int32).reshape(B, 1)

    grid = (B // block_b,)

    # VMEM sizing: resident weights + double-buffered per-tile working set.
    weight_bytes = 2 * dim * dim * 4 + 2 * dim * 4
    tile_bytes = 2 * block_b * (
        L * dim * context.dtype.itemsize + dim * question.dtype.itemsize
        + dim * context.dtype.itemsize + 2 * L * 4 + 4)
    vmem_limit = int(min(48 << 20, max(8 << 20, 2 * (weight_bytes + tile_bytes))))

    control, masked2d, logits2d = pl.pallas_call(
        _control_unit_kernel,
        out_shape=(
            jax.ShapeDtypeStruct((B, dim), context.dtype),
            jax.ShapeDtypeStruct((B, L), jnp.float32),   # lane-dense outputs
            jax.ShapeDtypeStruct((B, L), jnp.float32),
        ),
        grid=grid,
        in_specs=[
            pl.BlockSpec((block_b, dim), lambda i: (i, 0)),
            pl.BlockSpec((block_b, L, dim), lambda i: (i, 0, 0)),
            pl.BlockSpec((block_b, 1), lambda i: (i, 0)),
            pl.BlockSpec((dim, dim), lambda i: (0, 0)),   # weights stay resident
            pl.BlockSpec((1, dim), lambda i: (0, 0)),
            pl.BlockSpec((dim, dim), lambda i: (0, 0)),
            pl.BlockSpec((1, dim), lambda i: (0, 0)),
        ],
        out_specs=(
            pl.BlockSpec((block_b, dim), lambda i: (i, 0)),
            pl.BlockSpec((block_b, L), lambda i: (i, 0)),
            pl.BlockSpec((block_b, L), lambda i: (i, 0)),
        ),
        compiler_params=pltpu.CompilerParams(
            dimension_semantics=("parallel",),            # batch -> both TCs
            vmem_limit_bytes=vmem_limit,
        ),
    )(question, context, lens, w_shared, b_shared, w_step, b_step)

    # attn Linear bias: softmax is shift-invariant, so it is added here instead
    # of inside the kernel (drops a padded VMEM operand + DMA per grid step).
    b_attn = prepared["b_attn"]
    attn_weight = (masked2d + b_attn)[:, :, None]         # [B, L, 1]
    logits = (logits2d + b_attn)[:, :, None]              # [B, L, 1]
    return control, attn_weight, [logits]


def xavier_uniform(key, shape, dtype=jnp.float32):
    # nn.Linear weight shape is (out_dim, in_dim); bound = sqrt(6/(fan_in+fan_out))
    fan_out, fan_in = shape
    bound = (6.0 / (fan_in + fan_out)) ** 0.5
    return jax.random.uniform(key, shape, dtype, minval=-bound, maxval=bound)


def _reference_forward(step, context, question, context_lens, params):
    """Plain-JAX mirror of the PyTorch non-DAFT forward."""
    B, L, dim = context.shape
    q1 = jnp.tanh(question @ params["w_shared"].T + params["b_shared"])
    q2 = q1 @ params["w_steps"][step].T + params["b_steps"][step]
    cp = q2[:, None, :] * context                                   # [B, L, dim]
    logits = cp @ params["w_attn"].T + params["b_attn"]             # [B, L, 1]
    mask = (jnp.arange(L)[None, :] < context_lens[:, None]).astype(jnp.float32)
    masked = logits + (1.0 - mask)[:, :, None] * (-1e30)
    attn = jax.nn.softmax(masked, axis=1)
    control = jnp.sum(attn * context, axis=1)
    return control, masked, logits


if __name__ == "__main__":
    B, L, dim, max_step, step = 2, 8, 32, 4, 1

    key = jax.random.PRNGKey(0)
    k_ctx, k_q, k_steps, k_shared, k_attn = jax.random.split(key, 5)

    context = jax.random.normal(k_ctx, (B, L, dim), jnp.float32)
    question = jax.random.normal(k_q, (B, dim), jnp.float32)
    # length_to_mask uses max(context_lens) as width; keep max == L like PyTorch.
    context_lens = jnp.array([L, 5], dtype=jnp.int32)

    step_keys = jax.random.split(k_steps, max_step)
    params = {
        "w_shared": xavier_uniform(k_shared, (dim, dim)),
        "b_shared": jnp.zeros((dim,), jnp.float32),
        "w_steps": jnp.stack(
            [xavier_uniform(step_keys[s], (dim, dim)) for s in range(max_step)]
        ),
        "b_steps": jnp.zeros((max_step, dim), jnp.float32),
        "w_attn": xavier_uniform(k_attn, (1, dim)),
        "b_attn": jnp.zeros((1,), jnp.float32),
    }

    prepared = prepare_control_unit_params(params)

    control, attn_weight, attn_weights = control_unit_forward(
        step, context, question, context_lens, prepared
    )
    jax.block_until_ready(control)
    jax.block_until_ready(attn_weight)

    ref_control, ref_masked, ref_logits = _reference_forward(
        step, context, question, context_lens, params
    )

    assert control.shape == (B, dim)
    assert attn_weight.shape == (B, L, 1)
    assert attn_weights[0].shape == (B, L, 1)
    assert jnp.allclose(control, ref_control, atol=1e-4, rtol=1e-4)
    assert jnp.allclose(attn_weight, ref_masked, atol=1e-4, rtol=1e-4)
    assert jnp.allclose(attn_weights[0], ref_logits, atol=1e-4, rtol=1e-4)

    print("KERNEL_OK")
</pallas_src>

<mosaic_0001>
module attributes {stable_mosaic.version = 11 : i64} {
  func.func @_control_unit_kernel(%arg0: i32, %arg1: memref<2x32xf32, #tpu.memory_space<vmem>>, %arg2: memref<2x8x32xf32, #tpu.memory_space<vmem>>, %arg3: memref<2x1xi32, #tpu.memory_space<vmem>>, %arg4: memref<32x32xf32, #tpu.memory_space<vmem>>, %arg5: memref<1x32xf32, #tpu.memory_space<vmem>>, %arg6: memref<32x32xf32, #tpu.memory_space<vmem>>, %arg7: memref<1x32xf32, #tpu.memory_space<vmem>>, %arg8: memref<2x32xf32, #tpu.memory_space<vmem>>, %arg9: memref<2x8xf32, #tpu.memory_space<vmem>>, %arg10: memref<2x8xf32, #tpu.memory_space<vmem>>) attributes {dimension_semantics = [#tpu.dimension_semantics<parallel>], iteration_bounds = array<i64: 1>, scalar_prefetch = 0 : i64, scratch_operands = 0 : i64, tpu.core_type = #tpu.core_type<tc>, window_params = [{transform_indices = @transform_0, window_bounds = array<i64: 2, 32>}, {transform_indices = @transform_1, window_bounds = array<i64: 2, 8, 32>}, {transform_indices = @transform_2, window_bounds = array<i64: 2, 1>}, {pipeline_mode = #tpu.pipeline_mode<synchronous>, transform_indices = @transform_3, window_bounds = array<i64: 32, 32>}, {pipeline_mode = #tpu.pipeline_mode<synchronous>, transform_indices = @transform_4, window_bounds = array<i64: 1, 32>}, {pipeline_mode = #tpu.pipeline_mode<synchronous>, transform_indices = @transform_5, window_bounds = array<i64: 32, 32>}, {pipeline_mode = #tpu.pipeline_mode<synchronous>, transform_indices = @transform_6, window_bounds = array<i64: 1, 32>}, {transform_indices = @transform_7, window_bounds = array<i64: 2, 32>}, {transform_indices = @transform_8, window_bounds = array<i64: 2, 8>}, {transform_indices = @transform_9, window_bounds = array<i64: 2, 8>}]} {
    %c0 = arith.constant 0 : index
    %c0_0 = arith.constant 0 : index
    %0 = vector.load %arg1[%c0, %c0_0] : memref<2x32xf32, #tpu.memory_space<vmem>>, vector<2x32xf32>
    %c0_1 = arith.constant 0 : index
    %c0_2 = arith.constant 0 : index
    %1 = vector.load %arg4[%c0_1, %c0_2] : memref<32x32xf32, #tpu.memory_space<vmem>>, vector<32x32xf32>
    %cst = arith.constant dense<0.000000e+00> : vector<2x32xf32>
    %2 = tpu.matmul %0, %1, %cst {dimension_numbers = #tpu.dot_dimension_numbers<[1], [1], [0], [0], [0, 0, 1, 0], [], []>} : vector<2x32xf32>, vector<32x32xf32>, vector<2x32xf32> -> vector<2x32xf32>
    %c0_3 = arith.constant 0 : index
    %c0_4 = arith.constant 0 : index
    %3 = vector.load %arg5[%c0_3, %c0_4] : memref<1x32xf32, #tpu.memory_space<vmem>>, vector<1x32xf32>
    %4 = vector.broadcast %3 : vector<1x32xf32> to vector<2x32xf32>
    %5 = arith.addf %2, %4 : vector<2x32xf32>
    %6 = math.tanh %5 : vector<2x32xf32>
    %c0_5 = arith.constant 0 : index
    %c0_6 = arith.constant 0 : index
    %7 = vector.load %arg6[%c0_5, %c0_6] : memref<32x32xf32, #tpu.memory_space<vmem>>, vector<32x32xf32>
    %cst_7 = arith.constant dense<0.000000e+00> : vector<2x32xf32>
    %8 = tpu.matmul %6, %7, %cst_7 {dimension_numbers = #tpu.dot_dimension_numbers<[1], [1], [0], [0], [0, 0, 1, 0], [], []>} : vector<2x32xf32>, vector<32x32xf32>, vector<2x32xf32> -> vector<2x32xf32>
    %c0_8 = arith.constant 0 : index
    %c0_9 = arith.constant 0 : index
    %9 = vector.load %arg7[%c0_8, %c0_9] : memref<1x32xf32, #tpu.memory_space<vmem>>, vector<1x32xf32>
    %10 = vector.broadcast %9 : vector<1x32xf32> to vector<2x32xf32>
    %11 = arith.addf %8, %10 : vector<2x32xf32>
    %c0_10 = arith.constant 0 : index
    %c0_11 = arith.constant 0 : index
    %c0_12 = arith.constant 0 : index
    %12 = vector.load %arg2[%c0_10, %c0_11, %c0_12] : memref<2x8x32xf32, #tpu.memory_space<vmem>>, vector<2x8x32xf32>
    %13 = vector.shape_cast %11 : vector<2x32xf32> to vector<2x1x32xf32>
    %14 = vector.broadcast %13 : vector<2x1x32xf32> to vector<2x8x32xf32>
    %15 = arith.mulf %12, %14 : vector<2x8x32xf32>
    %cst_13 = arith.constant dense<0.000000e+00> : vector<2x8xf32>
    %16 = vector.multi_reduction <add>, %15, %cst_13 [2] : vector<2x8x32xf32> to vector<2x8xf32>
    %17 = tpu.iota {dimensions = array<i32: 1>} : vector<2x8xi32>
    %c0_14 = arith.constant 0 : index
    %c0_15 = arith.constant 0 : index
    %18 = vector.load %arg3[%c0_14, %c0_15] : memref<2x1xi32, #tpu.memory_space<vmem>>, vector<2x1xi32>
    %19 = vector.broadcast %18 : vector<2x1xi32> to vector<2x8xi32>
    %20 = arith.cmpi sge, %17, %19 : vector<2x8xi32>
    %21 = arith.extui %20 : vector<2x8xi1> to vector<2x8xi32>
    %22 = arith.sitofp %21 : vector<2x8xi32> to vector<2x8xf32>
    %cst_16 = arith.constant -1.000000e+30 : f32
    %23 = vector.broadcast %cst_16 : f32 to vector<2x8xf32>
    %24 = arith.mulf %22, %23 : vector<2x8xf32>
    %25 = arith.addf %16, %24 : vector<2x8xf32>
    %cst_17 = arith.constant dense<0xFF800000> : vector<2xf32>
    %26 = vector.multi_reduction <maximumf>, %25, %cst_17 [1] : vector<2x8xf32> to vector<2xf32>
    %27 = vector.shape_cast %26 : vector<2xf32> to vector<2x1xf32>
    %28 = vector.broadcast %27 : vector<2x1xf32> to vector<2x8xf32>
    %29 = arith.subf %25, %28 : vector<2x8xf32>
    %30 = math.exp %29 : vector<2x8xf32>
    %cst_18 = arith.constant dense<0.000000e+00> : vector<2xf32>
    %31 = vector.multi_reduction <add>, %30, %cst_18 [1] : vector<2x8xf32> to vector<2xf32>
    %32 = vector.shape_cast %31 : vector<2xf32> to vector<2x1xf32>
    %33 = vector.broadcast %32 : vector<2x1xf32> to vector<2x8xf32>
    %34 = arith.divf %30, %33 : vector<2x8xf32>
    %35 = vector.shape_cast %34 : vector<2x8xf32> to vector<2x1x8xf32>
    "tpu.trace_start"() <{level = 10 : i32, message = "bql,bld->bqd"}> : () -> ()
    %cst_19 = arith.constant dense<0.000000e+00> : vector<2x1x32xf32>
    %36 = tpu.matmul %35, %12, %cst_19 {dimension_numbers = #tpu.dot_dimension_numbers<[2], [1], [1], [2], [0, 0, 0, 1, 1, 2], [0], [0]>} : vector<2x1x8xf32>, vector<2x8x32xf32>, vector<2x1x32xf32> -> vector<2x1x32xf32>
    "tpu.trace_stop"() : () -> ()
    %37 = vector.shape_cast %36 : vector<2x1x32xf32> to vector<2x32xf32>
    %c0_20 = arith.constant 0 : index
    %c0_21 = arith.constant 0 : index
    %38 = vector.load %arg8[%c0_20, %c0_21] : memref<2x32xf32, #tpu.memory_space<vmem>>, vector<2x32xf32>
    tpu.vector_store %arg8[%c0_20, %c0_21], %37 {strides = array<i32>} : memref<2x32xf32, #tpu.memory_space<vmem>>, vector<2x32xf32>,
    %c0_22 = arith.constant 0 : index
    %c0_23 = arith.constant 0 : index
    %39 = vector.load %arg9[%c0_22, %c0_23] : memref<2x8xf32, #tpu.memory_space<vmem>>, vector<2x8xf32>
    tpu.vector_store %arg9[%c0_22, %c0_23], %25 {strides = array<i32>} : memref<2x8xf32, #tpu.memory_space<vmem>>, vector<2x8xf32>,
    %c0_24 = arith.constant 0 : index
    %c0_25 = arith.constant 0 : index
    %40 = vector.load %arg10[%c0_24, %c0_25] : memref<2x8xf32, #tpu.memory_space<vmem>>, vector<2x8xf32>
    tpu.vector_store %arg10[%c0_24, %c0_25], %16 {strides = array<i32>} : memref<2x8xf32, #tpu.memory_space<vmem>>, vector<2x8xf32>,
    return
  }
  func.func @transform_0(%arg0: i32) -> (i32, i32) {
    %c0_i32 = arith.constant 0 : i32
    %c0_i32_0 = arith.constant 0 : i32
    return %arg0, %c0_i32 : i32, i32
  }
  func.func @transform_1(%arg0: i32) -> (i32, i32, i32) {
    %c0_i32 = arith.constant 0 : i32
    %c0_i32_0 = arith.constant 0 : i32
    %c0_i32_1 = arith.constant 0 : i32
    return %arg0, %c0_i32, %c0_i32_0 : i32, i32, i32
  }
  func.func @transform_2(%arg0: i32) -> (i32, i32) {
    %c0_i32 = arith.constant 0 : i32
    %c0_i32_0 = arith.constant 0 : i32
    return %arg0, %c0_i32 : i32, i32
  }
  func.func @transform_3(%arg0: i32) -> (i32, i32) {
    %c0_i32 = arith.constant 0 : i32
    %c0_i32_0 = arith.constant 0 : i32
    %c0_i32_1 = arith.constant 0 : i32
    return %c0_i32, %c0_i32_0 : i32, i32
  }
  func.func @transform_4(%arg0: i32) -> (i32, i32) {
    %c0_i32 = arith.constant 0 : i32
    %c0_i32_0 = arith.constant 0 : i32
    %c0_i32_1 = arith.constant 0 : i32
    return %c0_i32, %c0_i32_0 : i32, i32
  }
  func.func @transform_5(%arg0: i32) -> (i32, i32) {
    %c0_i32 = arith.constant 0 : i32
    %c0_i32_0 = arith.constant 0 : i32
    %c0_i32_1 = arith.constant 0 : i32
    return %c0_i32, %c0_i32_0 : i32, i32
  }
  func.func @transform_6(%arg0: i32) -> (i32, i32) {
    %c0_i32 = arith.constant 0 : i32
    %c0_i32_0 = arith.constant 0 : i32
    %c0_i32_1 = arith.constant 0 : i32
    return %c0_i32, %c0_i32_0 : i32, i32
  }
  func.func @transform_7(%arg0: i32) -> (i32, i32) {
    %c0_i32 = arith.constant 0 : i32
    %c0_i32_0 = arith.constant 0 : i32
    return %arg0, %c0_i32 : i32, i32
  }
  func.func @transform_8(%arg0: i32) -> (i32, i32) {
    %c0_i32 = arith.constant 0 : i32
    %c0_i32_0 = arith.constant 0 : i32
    return %arg0, %c0_i32 : i32, i32
  }
  func.func @transform_9(%arg0: i32) -> (i32, i32) {
    %c0_i32 = arith.constant 0 : i32
    %c0_i32_0 = arith.constant 0 : i32
    return %arg0, %c0_i32 : i32, i32
  }
}

</mosaic_0001>

<bundles_post_ra>
// kernel: tpu_custom_call.1
= control target key start
LH: loop header
LB: loop body
LE: loop exit
PB: predicated region body
PF: predicated region fallthrough
CT: control target
= control target key end

     0   :  { %15 = vsyncpa [#allocation3], 0  ;;  %s1082_s0 = inlined_call_operand.vmem [shape: f32[2,32], index: 0, kind: input, shape index: {}]   ;;  %s1083_s1 = inlined_call_operand.hbm [shape: f32[2,8,32], index: 1, kind: input, shape index: {}]   ;;  %s1084_s2 = inlined_call_operand.vmem [shape: s32[2,1], index: 2, kind: input, shape index: {}]   ;;  %s1085_s3 = inlined_call_operand.hbm [shape: f32[32,32], index: 3, kind: input, shape index: {}]   ;;  %s1086_s4 = inlined_call_operand.vmem [shape: f32[1,32], index: 4, kind: input, shape index: {}]   ;;  %s1087_s5 = inlined_call_operand.hbm [shape: f32[32,32], index: 5, kind: input, shape index: {}]   ;;  %s1088_s6 = inlined_call_operand.vmem [shape: f32[1,32], index: 6, kind: input, shape index: {}]   ;;  %s1089_s7 = inlined_call_operand.hbm [shape: f32[2,32], index: 7, kind: output, shape index: {0}]   ;;  %s1090_s8 = inlined_call_operand.hbm [shape: f32[2,8], index: 8, kind: output, shape index: {1}]   ;;  %s1091_s9 = inlined_call_operand.hbm [shape: f32[2,8], index: 9, kind: output, shape index: {2}]  }
   0x1   :  { %16 = vsyncpa [#allocation6], 0 }
   0x2   :  { %17 = vsyncpa [#allocation4], 0 }
   0x3   :  { %18 = vsyncpa [#allocation10], 0  ;;  %s882_s30 = smov [#allocation5]   ;;  %s883_s11 = smov [#allocation2]  }
   0x4   :  { %s40_s10 = sshll.u32 %s882_s30, 4  ;;  %s26_s12 = sshll.u32 %s883_s11, 4  ;;  %s41_s10 = int_to_ptr.vmem [resolvable:$true] %s40_s10  ;;  %s945_s12 = int_to_ptr.vmem [resolvable:$true] %s26_s12 }
   0x5   :  { %s742_s15 = scalar_lea.hbm %s1085_s3, 512 }
   0x6   :  { %p743_p0 = scmp.ne.s32.totalorder %s1085_s3, %s742_s15  ;;  %p746_p1 = scmp.lt.u32.totalorder %s742_s15, %s1085_s3 }
   0x8   :  { %p748_p2 = pnand %p746_p1, %p743_p0 }
   0xa   :  { %751 = shalt.err (!%p748_p2)
}
   0xb   :  { %s752_s20 = scalar_lea.vmem %s41_s10, 512  ;;  %p757_p4 = scmp.lt.s32.totalorder %s41_s10, %s41_s10 }
   0xc   :  { %p753_p3 = scmp.ne.s32.totalorder %s41_s10, %s752_s20  ;;  %p758_p5 = scmp.lt.s32.totalorder %s752_s20, %s752_s20 }
   0xe   :  { %p759_p6 = por %p758_p5, %p757_p4 }
  0x10   :  { %p760_p7 = pnand %p759_p6, %p753_p3 }
  0x12   :  { %763 = shalt.err (!%p760_p7)
}
  0x13   :  { %s884_s21 = smov 128   ;;  %s885_s22 = smov 8  }
  0x14   :  { %46 = dma.hbm_to_vmem [thread:$0]  %s1085_s3, 512, %s41_s10, [#allocation6], %s884_s21, %s884_s21, %s885_s22  }
  0x15   :  { %s764_s27 = scalar_lea.hbm %s1083_s1, 256 }
  0x16   :  { %p765_p8 = scmp.ne.s32.totalorder %s1083_s1, %s764_s27  ;;  %p768_p9 = scmp.lt.u32.totalorder %s764_s27, %s1083_s1 }
  0x18   :  { %p770_p10 = pnand %p768_p9, %p765_p8 }
  0x1a   :  { %773 = shalt.err (!%p770_p10)
}
  0x1b   :  { %s774_s13 = scalar_lea.vmem %s945_s12, 256  ;;  %p779_p12 = scmp.lt.s32.totalorder %s945_s12, %s945_s12 }
  0x1c   :  { %p775_p11 = scmp.ne.s32.totalorder %s945_s12, %s774_s13  ;;  %p780_p13 = scmp.lt.s32.totalorder %s774_s13, %s774_s13 }
  0x1e   :  { %p781_p0 = por %p780_p13, %p779_p12 }
  0x20   :  { %p782_p1 = pnand %p781_p0, %p775_p11 }
  0x22   :  { %785 = shalt.err (!%p782_p1)
}
  0x23   :  { %32 = dma.hbm_to_vmem [thread:$0]  %s1083_s1, 256, %s945_s12, [#allocation3], %s884_s21, %s884_s21, %s885_s22  }
  0x24   :  { %s886_s14 = smov [#allocation7]   ;;  %s786_s18 = scalar_lea.hbm %s1087_s5, 512 }
  0x25   :  { %s54_s15 = sshll.u32 %s886_s14, 4  ;;  %p787_p2 = scmp.ne.s32.totalorder %s1087_s5, %s786_s18  ;;  %s55_s15 = int_to_ptr.vmem [resolvable:$true] %s54_s15 }
  0x26   :  { %p790_p3 = scmp.lt.u32.totalorder %s786_s18, %s1087_s5 }
  0x28   :  { %p792_p4 = pnand %p790_p3, %p787_p2 }
  0x2a   :  { %795 = shalt.err (!%p792_p4)
}
  0x2b   :  { %s796_s25 = scalar_lea.vmem %s55_s15, 512  ;;  %p801_p6 = scmp.lt.s32.totalorder %s55_s15, %s55_s15 }
  0x2c   :  { %p797_p5 = scmp.ne.s32.totalorder %s55_s15, %s796_s25  ;;  %p802_p7 = scmp.lt.s32.totalorder %s796_s25, %s796_s25 }
  0x2e   :  { %p803_p8 = por %p802_p7, %p801_p6 }
  0x30   :  { %p804_p9 = pnand %p803_p8, %p797_p5 }
  0x32   :  { %807 = shalt.err (!%p804_p9)
}
  0x33   :  { %60 = dma.hbm_to_vmem [thread:$0]  %s1087_s5, 512, %s55_s15, [#allocation6], %s884_s21, %s884_s21, %s885_s22  }
  0x34   :  { %874 = dma.done.wait [#allocation3], 256  }
  0x35   :  { %875 = vsyncadd [#allocation3], 4294967040 }
  0x36   :  { %876 = dma.done.wait [#allocation6], 1024  }
  0x37   :  { %877 = vsyncadd [#allocation6], 4294966272  ;;  %v887_v0 = vmov 0.0|0.0   ;;  %vm888_vm0 = vmmov 0   ;;  %v889_v1 = vmov 0.0   ;;  %vm84_vm1 = vcmask 261120  }
  0x38   :  { %701 = vmatprep.subr.bf16.mxu0 %v887_v0  ;;  %677 = vmatprep.mubr.msk.f32.mxu0 %vm888_vm0, %v889_v1  ;;  %v73_v2 = vld [vmem:[#allocation5] sm:$0xff]  ;;  %v74_v3 = vld [vmem:[#allocation5 + $0x8] sm:$0xff]  ;;  %vm1001_vm2 = vmpackc.low %vm84_vm1, %vm84_vm1  ;;  %v890_v17 = vmov 0   ;;  %v273_v22 = vlaneseq  ;;  %v891_v33 = vmov 1966171168   ;;  %vm355_vm4 = vcmask 1041409  }
  0x39   :  { %709 = vmatprep.subr.bf16.mxu1 %v887_v0  ;;  %688 = vmatprep.mubr.msk.f32.mxu1 %vm888_vm0, %v889_v1  ;;  %v702_v5 = vpack.c.bf16 %v74_v3, %v73_v2  ;;  %v171_v6 = vld [vmem:[#allocation7] sm:$0xff]  ;;  %v172_v7 = vld [vmem:[#allocation7 + $0x8] sm:$0xff]  ;;  %v75_v9 = vld [vmem:[#allocation5 + $0x10] sm:$0xff]  ;;  %v271_v34 = vunpack.c.l.s4 %v891_v33  ;;  %vm358_vm5 = vcmask 58368   ;;  %vm423_vm6 = vcmask 64512  }
  0x3a   :  { %v710_v8 = vpack.c.bf16 %v172_v7, %v171_v6  ;;  %v76_v10 = vld [vmem:[#allocation5 + $0x18] sm:$0xff]  ;;  %v72_v12 = vld [vmem:[%s1082_s0] sm:$0x3]  ;;  %730 = vset.pattern.permute.xlu0 %v890_v17  ;;  %731 = vset.pattern.permute.xlu1 %v890_v17  ;;  %v274_v23 = vshrl.u32 %v273_v22, 7  ;;  %v311_v24 = vand.u32 127, %v273_v22 }
  0x3b   :  { %704 = vmatpush3.bf16.xpose.msk.msra.mxu0 %vm1001_vm2, %v702_v5  ;;  %v706_v11 = vpack.c.bf16 %v76_v10, %v75_v9  ;;  %v173_v13 = vld [vmem:[#allocation7 + $0x10] sm:$0xff]  ;;  %v174_v14 = vld [vmem:[#allocation7 + $0x18] sm:$0xff]  ;;  %v272_v35 = vunpack.c.0.s8 %v271_v34 }
  0x3c   :  { %705 = vmatprep.subr.bf16.mxu0 %v887_v0  ;;  %712 = vmatpush3.bf16.xpose.msk.msra.mxu1 %vm1001_vm2, %v710_v8  ;;  %v714_v15 = vpack.c.bf16 %v174_v14, %v173_v13  ;;  %v312_v16 = vld [vmem:[%s1084_s2] sm:$0x3]  ;;  %v1026_v27 = vsub.s32 0, %v274_v23  ;;  %v268_v32 = vld [vmem:[#allocation2 + $0x8] sm:$0xff]  ;;  %v330_v51 = vsub.s32 1, %v274_v23  ;;  %v349_v54 = vsub.s32 %v311_v24, %v274_v23 }
  0x3d   :  { %713 = vmatprep.subr.bf16.mxu1 %v887_v0  ;;  %314 = vperm.xlu0 %730, %v312_v16   ;;  %v640_v18 = vld [vmem:[%s1086_s4] ss:$0 sm:$0xff]  ;;  %v275_v37 = vsub.s32 %v272_v35, %v274_v23 }
  0x3e   :  { %v267_v31 = vld [vmem:[#allocation2] sm:$0xff] }
  0x3f   :  { %v646_v36 = vld [vmem:[%s1088_s6] ss:$0 sm:$0xff]  ;;  %s892_s6 = smov [#allocation9]  }
  0x40   :  { %s613_s28 = sshll.u32 %s892_s6, 4  ;;  %s614_s28 = int_to_ptr.vmem [resolvable:$true] %s613_s28 }
  0x41   :  { %s808_s29 = scalar_lea.vmem %s614_s28, 32  ;;  %p813_p11 = scmp.lt.s32.totalorder %s614_s28, %s614_s28 }
  0x42   :  { %p809_p10 = scmp.ne.s32.totalorder %s614_s28, %s808_s29  ;;  %p814_p12 = scmp.lt.s32.totalorder %s808_s29, %s808_s29 }
  0x43   :  { %708 = vmatpush3.bf16.xpose.msk.msra.mxu0 %vm1001_vm2, %v706_v11 }
  0x44   :  { %691 = vmatprep.subr.mxu0 %v889_v1  ;;  %716 = vmatpush3.bf16.xpose.msk.msra.mxu1 %vm1001_vm2, %v714_v15  ;;  %p815_p13 = por %p814_p12, %p813_p11 }
  0x45   :  { %696 = vmatprep.subr.mxu1 %v889_v1 }
  0x46   :  { %p816_p0 = pnand %p815_p13, %p809_p10 }
  0x4a   :  { %678 = vmatmul.mubr.msk.f32.vlgmr.msra.gmra.mrb[0].mxu0 %vm84_vm1, %v72_v12 }
  0x4b   :  { %693 = vmatprep.mubr.msk.f32.mxu0 %vm888_vm0, %v889_v1  ;;  %692 = vmatpush3.msra.mxu0 %v267_v31 }
  0xbc   :  { %v315_v26 = vpop.permute.xlu0 %314 }
  0xbd   :  { %vm316_vm3 = vcmp.ge.s32.totalorder %v311_v24, %v315_v26 }
  0xbe   :  { %v652_v28 = vsel %vm316_vm3, 1.0, %v889_v1 }
  0xbf   :  { %v319_v29 = vmul.f32 -1e+30, %v652_v28 }
  0xc1   :  { %v324_v30 = vrot.slane %v319_v29, %v1026_v27  ;;  %v331_v52 = vrot.slane %v319_v29, %v330_v51 }
  0xc3   :  { %326 = vbcast.lane.b32.xlu1 %v324_v30, 256 }
 0x11d   :  { %v166_v19 = vpop.f32.mrb[0].mxu0 }
 0x11e   :  { %v167_v20 = vadd.f32 %v640_v18, %v166_v19  ;;  %v679_v21 = vpop.f32.mrb[1].mxu0 }
 0x120   :  { %732 = vtanh.f32 %v167_v20 }
 0x12a   :  { %v733_v25 = vpop.eup %732 }
 0x12b   :  { %689 = vmatmul.mubr.msk.f32.vlgmr.msra.gmra.mrb[0].mxu1 %vm84_vm1, %v733_v25 }
 0x12c   :  { %698 = vmatprep.mubr.msk.f32.mxu1 %vm888_vm0, %v889_v1  ;;  %697 = vmatpush3.msra.mxu1 %v268_v32 }
 0x135   :  { %v327_v53 = vpop.permute.xlu1 %326 }
 0x1fe   :  { %v263_v38 = vpop.f32.mrb[0].mxu1 }
 0x1ff   :  { %v264_v39 = vadd.f32 %v646_v36, %v263_v38  ;;  %v690_v40 = vpop.f32.mrb[1].mxu1 }
 0x201   :  { %v276_v41 = vrot.slane %v264_v39, %v275_v37 }
 0x203   :  { %v277_v42 = vcombine.high %v276_v41, %v276_v41  ;;  %v284_v43 = vrot.slane %v276_v41, %v275_v37 }
 0x205   :  { %v295_v44 = vrot.slane %v284_v43, %v1026_v27  ;;  %v291_v45 = vrot.slane %v277_v42, %v275_v37 }
 0x207   :  { %v302_v46 = vmul.f32 %v295_v44, %v267_v31  ;;  %v299_v47 = vrot.slane %v291_v45, %v1026_v27 }
 0x209   :  { %v304_v48 = vsel %vm84_vm1, %v302_v46, 0.0  ;;  %v303_v49 = vmul.f32 %v299_v47, %v268_v32 }
 0x20a   :  { %305 = vadd.xlane.f32.xlu0 %v304_v48 }
 0x20b   :  { %v307_v50 = vsel %vm84_vm1, %v303_v49, 0.0 }
 0x20c   :  { %308 = vadd.xlane.f32.xlu1 %v307_v50 }
 0x21d   :  { %333 = vbcast.lane.b32.xlu1 %v331_v52, 256 }
 0x297   :  { %v306_v55 = vpop.xlane.xlu0 %305 }
 0x298   :  { %v337_v56 = vadd.f32 %v327_v53, %v306_v55  ;;  %v589_v58 = vrot.slane %v306_v55, %v349_v54 }
 0x299   :  { %v309_v57 = vpop.xlane.xlu1 %308 }
 0x29a   :  { %v593_v59 = vrot.slane %v309_v57, %v349_v54  ;;  %342 = vperm.xlu1 %731, %v337_v56  }
 0x29c   :  { %v594_v60 = vsel %vm355_vm4, %v593_v59, %v589_v58 }
 0x29d   :  { %v334_v61 = vpop.permute.xlu1 %333  ;;  %596 = vst.msk [vmem:[#allocation11] sm:$0x3] %vm358_vm5, %v594_v60 }
 0x29e   :  { %v338_v62 = vadd.f32 %v334_v61, %v309_v57 }
 0x2a0   :  { %345 = vperm.xlu1 %731, %v338_v62  }
 0x319   :  { %v343_v63 = vpop.permute.xlu1 %342 }
 0x31a   :  { %v350_v1 = vrot.slane %v343_v63, %v349_v54 }
 0x31f   :  { %v346_v0 = vpop.permute.xlu1 %345 }
 0x320   :  { %v354_v2 = vrot.slane %v346_v0, %v349_v54 }
 0x322   :  { %v356_v3 = vsel %vm355_vm4, %v354_v2, %v350_v1 }
 0x323   :  { %v359_v4 = vsel %vm358_vm5, %v356_v3, -inf  ;;  %583 = vst.msk [vmem:[#allocation9] sm:$0x3] %vm358_vm5, %v356_v3 }
 0x324   :  { %360 = vmax.xlane.f32.xlu1 %v359_v4 }
 0x3b1   :  { %v361_v5 = vpop.xlane.xlu1 %360 }
 0x3b2   :  { %v366_v6 = vrot.slane %v361_v5, %v1026_v27  ;;  %v370_v7 = vrot.slane %v361_v5, %v330_v51 }
 0x3b4   :  { %v373_v8 = vsub.f32 %v337_v56, %v366_v6  ;;  %v374_v9 = vsub.f32 %v338_v62, %v370_v7 }
 0x3b6   :  { %v375_v10 = vmul.f32 1.442695, %v373_v8  ;;  %v377_v11 = vmul.f32 1.442695, %v374_v9 }
 0x3b8   :  { %734 = vpow2.f32 %v375_v10 }
 0x3b9   :  { %736 = vpow2.f32 %v377_v11 }
 0x3c2   :  { %v735_v12 = vpop.eup %734 }
 0x3c3   :  { %382 = vperm.xlu0 %730, %v735_v12   ;;  %v737_v13 = vpop.eup %736 }
 0x3c7   :  { %385 = vperm.xlu0 %730, %v737_v13  }
 0x442   :  { %v383_v14 = vpop.permute.xlu0 %382 }
 0x443   :  { %v390_v16 = vrot.slane %v383_v14, %v349_v54 }
 0x446   :  { %v386_v15 = vpop.permute.xlu0 %385 }
 0x447   :  { %v394_v17 = vrot.slane %v386_v15, %v349_v54 }
 0x449   :  { %v395_v18 = vsel %vm355_vm4, %v394_v17, %v390_v16 }
 0x44a   :  { %v397_v19 = vsel %vm358_vm5, %v395_v18, 0.0 }
 0x44b   :  { %398 = vadd.xlane.f32.xlu0 %v397_v19 }
 0x4d8   :  { %v399_v20 = vpop.xlane.xlu0 %398 }
 0x4d9   :  { %v408_v21 = vrot.slane %v399_v20, %v330_v51  ;;  %v404_v22 = vrot.slane %v399_v20, %v1026_v27 }
 0x4db   :  { %738 = vrcp.f32 %v408_v21 }
 0x4dc   :  { %740 = vrcp.f32 %v404_v22 }
 0x4e5   :  { %v739_v23 = vpop.eup %738 }
 0x4e6   :  { %v414_v24 = vmul.f32 %v739_v23, %v737_v13  ;;  %v741_v25 = vpop.eup %740 }
 0x4e7   :  { %v412_v26 = vmul.f32 %v741_v25, %v735_v12 }
 0x4e8   :  { %498 = vperm.xlu1 %731, %v414_v24  }
 0x4ec   :  { %417 = vperm.xlu1 %731, %v412_v26  }
 0x567   :  { %v499_v28 = vpop.permute.xlu1 %498 }
 0x568   :  { %v503_v29 = vrot.slane %v499_v28, %v349_v54 }
 0x56a   :  { %699 = vmatmul.mubr.msk.f32.vlgmr.msra.gmra.mrb[2].mxu1 %vm423_vm6, %v503_v29 }
 0x56b   :  { %v418_v30 = vpop.permute.xlu1 %417 }
 0x56c   :  { %v422_v31 = vrot.slane %v418_v30, %v349_v54 }
 0x56e   :  { %694 = vmatmul.mubr.msk.f32.vlgmr.msra.gmra.mrb[2].mxu0 %vm423_vm6, %v422_v31 }
 0x56f   :  { %819 = shalt.err (!%p816_p0)
}
 0x570   :  { %s820_s13 = scalar_lea.hbm %s1090_s8, 32 }
 0x571   :  { %p821_p1 = scmp.ne.s32.totalorder %s1090_s8, %s820_s13  ;;  %p824_p2 = scmp.lt.u32.totalorder %s820_s13, %s1090_s8 }
 0x573   :  { %p826_p3 = pnand %p824_p2, %p821_p1 }
 0x575   :  { %829 = shalt.err (!%p826_p3)
}
 0x576   :  { %616 = dma.vmem_to_hbm [thread:$0]  %s614_s28, 32, %s1090_s8, [#allocation10]  }
 0x577   :  { %s893_s18 = smov [#allocation11]  }
 0x578   :  { %s623_s19 = sshll.u32 %s893_s18, 4  ;;  %s624_s19 = int_to_ptr.vmem [resolvable:$true] %s623_s19 }
 0x579   :  { %s830_s20 = scalar_lea.vmem %s624_s19, 32  ;;  %p835_p5 = scmp.lt.s32.totalorder %s624_s19, %s624_s19 }
 0x57a   :  { %p831_p4 = scmp.ne.s32.totalorder %s624_s19, %s830_s20  ;;  %p836_p6 = scmp.lt.s32.totalorder %s830_s20, %s830_s20 }
 0x57c   :  { %p837_p7 = por %p836_p6, %p835_p5 }
 0x57e   :  { %p838_p8 = pnand %p837_p7, %p831_p4 }
 0x580   :  { %841 = shalt.err (!%p838_p8)
}
 0x581   :  { %s842_s25 = scalar_lea.hbm %s1091_s9, 32 }
 0x582   :  { %p843_p9 = scmp.ne.s32.totalorder %s1091_s9, %s842_s25  ;;  %p846_p10 = scmp.lt.u32.totalorder %s842_s25, %s1091_s9 }
 0x584   :  { %p848_p11 = pnand %p846_p10, %p843_p9 }
 0x586   :  { %851 = shalt.err (!%p848_p11)
}
 0x587   :  { %626 = dma.vmem_to_hbm [thread:$0]  %s624_s19, 32, %s1091_s9, [#allocation10]   ;;  %vm581_vm7 = vcmask 254976  }
 0x588   :  { %s894_s26 = smov [#allocation8]  }
 0x589   :  { %s603_s0 = sshll.u32 %s894_s26, 4  ;;  %s604_s0 = int_to_ptr.vmem [resolvable:$true] %s603_s0 }
 0x58a   :  { %s852_s27 = scalar_lea.vmem %s604_s0, 32  ;;  %p857_p13 = scmp.lt.s32.totalorder %s604_s0, %s604_s0 }
 0x58b   :  { %p853_p12 = scmp.ne.s32.totalorder %s604_s0, %s852_s27  ;;  %p858_p0 = scmp.lt.s32.totalorder %s852_s27, %s852_s27 }
 0x58d   :  { %p859_p1 = por %p858_p0, %p857_p13 }
 0x58f   :  { %p860_p2 = pnand %p859_p1, %p853_p12 }
 0x63d   :  { %v572_v27 = vpop.f32.mrb[2].mxu1 }
 0x63e   :  { %v700_v32 = vpop.f32.mrb[3].mxu1  ;;  %v578_v33 = vrot.slane %v572_v27, 7 }
 0x641   :  { %v492_v34 = vpop.f32.mrb[2].mxu0 }
 0x642   :  { %v579_v35 = vsel %vm355_vm4, %v578_v33, %v492_v34  ;;  %v695_v36 = vpop.f32.mrb[3].mxu0 }
 0x643   :  { %582 = vst.msk [vmem:[#allocation8] sm:$0x3] %vm581_vm7, %v579_v35 }
 0x644   :  { %863 = shalt.err (!%p860_p2)
}
 0x645   :  { %s864_s4 = scalar_lea.hbm %s1089_s7, 32 }
 0x646   :  { %p865_p3 = scmp.ne.s32.totalorder %s1089_s7, %s864_s4  ;;  %p868_p4 = scmp.lt.u32.totalorder %s864_s4, %s1089_s7 }
 0x648   :  { %p870_p5 = pnand %p868_p4, %p865_p3 }
 0x64a   :  { %873 = shalt.err (!%p870_p5)
}
 0x64b   :  { %606 = dma.vmem_to_hbm [thread:$0]  %s604_s0, 32, %s1089_s7, [#allocation4]  }
 0x64c   :  { %878 = dma.done.wait [#allocation4], 32  }
 0x64d   :  { %879 = vsyncadd [#allocation4], 4294967264 }
 0x64e   :  { %880 = dma.done.wait [#allocation10], 64  }
 0x64f   :  { %881 = vsyncadd [#allocation10], 4294967232 }
 0x650   :  { %636 = vsyncpa [#allocation3], 1 }
 0x651   :  { %637 = vsyncpa [#allocation6], 1 }
 0x652   :  { %638 = vsyncpa [#allocation4], 1 }
 0x653   :  { %639 = vsyncpa [#allocation10], 1 }

</bundles_post_ra>
